<compile_context>
chip_gen: v5e
topology: v5e:2x2
jax: 0.10.0
libtpu: 0.0.40
codegen_flags: <defaults>
</compile_context>

<pallas_src>
import functools

import jax
import jax.numpy as jnp
from jax.experimental import pallas as pl
from jax.experimental.pallas import tpu as pltpu

_MIN_PALLAS_BYTES = 1 << 20   # below ~1 MiB XLA's fused scalar-FMA has less fixed overhead
_PAD_LANES = 1024             # slab width for the non-128-divisible fallback


def _ceil_div(a: int, b: int) -> int:
    return -(-a // b)


@functools.lru_cache(maxsize=1)
def _tpu_config():
    """Returns (tile_bytes, vmem_limit_bytes, num_tensorcores, native_bf16)."""
    kind = ""
    try:
        kind = jax.devices()[0].device_kind.lower()
    except Exception:
        pass
    if "v7" in kind:                       # 64 MiB VMEM/TC, 3.2 TB/s HBM, 2 TCs
        return (8 << 20, 48 << 20, 2, True)
    if "v6" in kind:                       # 128 MiB VMEM, ~1.4 TB/s, 1 TC, bf16 VPU
        return (16 << 20, 72 << 20, 1, True)
    if "v5e" in kind or "lite" in kind:    # v5e: 128 MiB VMEM, 1 TC, no bf16 VPU
        return (16 << 20, 72 << 20, 1, False)
    if "v5" in kind or "v4" in kind:       # v5p / v4 megacore: 2 TCs
        return (16 << 20, 72 << 20, 2, False)
    return (8 << 20, 48 << 20, 2, False)   # unknown: conservative budgets


def _linreg_kernel(w_ref, b_ref, x_ref, o_ref, *, compute_dtype):
    # w_ref / b_ref: (1,) f32 scalars in SMEM.  x_ref / o_ref: lane-dense VMEM tiles.
    w = w_ref[0].astype(compute_dtype)
    b = b_ref[0].astype(compute_dtype)
    # TODO(synk): integer x dtypes would need round-to-nearest on the final cast;
    # the reference module only ever uses float tensors.
    o_ref[...] = (x_ref[...].astype(compute_dtype) * w + b).astype(o_ref.dtype)


def _choose_block_rows(rows: int, d: int, itemsize: int,
                       tile_bytes: int, num_cores: int) -> int:
    """Largest sublane-aligned row block within the tile budget; on 2-TC chips
    force >=2 blocks and prefer an even block count (no idle-core tail step)."""
    sub = max(8, 32 // max(1, itemsize))            # 8 f32, 16 bf16, 32 int8/fp8
    bytes_per_row = max(1, d * itemsize)
    rows_fit = max(sub, (tile_bytes // bytes_per_row) // sub * sub)
    block_rows = min(rows_fit, rows)

    if num_cores > 1 and rows >= 2 * sub:
        # At least two blocks so both TensorCores get work.
        half = max(sub, _ceil_div(_ceil_div(rows, 2), sub) * sub)
        block_rows = min(block_rows, half)
        # Nudge toward an even block count so neither core idles on the tail.
        nblocks = _ceil_div(rows, block_rows)
        if nblocks > 1 and nblocks % 2 == 1:
            base = _ceil_div(rows, nblocks + 1)
            for cand in (_ceil_div(base, sub) * sub, (base // sub) * sub):
                if sub <= cand <= block_rows and _ceil_div(rows, cand) % 2 == 0:
                    block_rows = cand
                    break

    if block_rows >= rows:
        return rows                                  # full-extent block is always legal
    return max(sub, (block_rows // sub) * sub)


def _pallas_forward_2d(x2: jax.Array, w1: jax.Array, b1: jax.Array,
                       *, compute_dtype) -> jax.Array:
    rows, d = x2.shape
    tile_bytes, vmem_limit, num_cores, _ = _tpu_config()
    block_rows = _choose_block_rows(rows, d, x2.dtype.itemsize, tile_bytes, num_cores)
    grid = (pl.cdiv(rows, block_rows),)

    kernel = functools.partial(_linreg_kernel, compute_dtype=compute_dtype)
    return pl.pallas_call(
        kernel,
        out_shape=jax.ShapeDtypeStruct((rows, d), x2.dtype),
        grid_spec=pl.GridSpec(
            grid=grid,
            in_specs=[
                pl.BlockSpec(memory_space=pltpu.SMEM),            # weights (1,)
                pl.BlockSpec(memory_space=pltpu.SMEM),            # bias    (1,)
                pl.BlockSpec((block_rows, d), lambda i: (i, 0)),  # x tile (lane-dense)
            ],
            out_specs=pl.BlockSpec((block_rows, d), lambda i: (i, 0)),
        ),
        compiler_params=pltpu.CompilerParams(
            dimension_semantics=("parallel",),
            vmem_limit_bytes=vmem_limit,
        ),
    )(w1, b1, x2)


def linear_regression_forward(x: jax.Array, weights: jax.Array, bias: jax.Array,
                              *, force_pallas: bool = False) -> jax.Array:
    """y = weights * x + bias with scalar (shape-(1,)) weights/bias; any-rank x."""
    w1 = weights.reshape((1,)).astype(jnp.float32)
    b1 = bias.reshape((1,)).astype(jnp.float32)

    nbytes = x.size * x.dtype.itemsize
    if not force_pallas and nbytes < _MIN_PALLAS_BYTES:
        # Tiny input: a pipelined grid step costs more than XLA's fused scalar FMA.
        return (w1[0] * x.astype(jnp.float32) + b1[0]).astype(x.dtype)

    _, _, _, native_bf16 = _tpu_config()
    compute_dtype = x.dtype if (x.dtype == jnp.bfloat16 and native_bf16) else jnp.float32

    # Pure elementwise op: free to re-slab the flattened array into a wide,
    # lane-dense (rows, W) layout so stores compile to unmasked vst.
    total = x.size
    for w_lanes in (4096, 2048, 1024, 512, 256, 128):
        if total % w_lanes == 0:
            x2 = x.reshape((total // w_lanes, w_lanes))
            y2 = _pallas_forward_2d(x2, w1, b1, compute_dtype=compute_dtype)
            return y2.reshape(x.shape)

    # total not a multiple of 128: pad the flat array to a lane-dense slab, run
    # the same kernel, slice the tail off.  One extra HBM pass in this rare case,
    # but block size stays bounded and stores stay on the unmasked fast path.
    flat = x.reshape((-1,))
    padded = _ceil_div(total, _PAD_LANES) * _PAD_LANES
    flat = jnp.pad(flat, (0, padded - total))
    y2 = _pallas_forward_2d(flat.reshape((padded // _PAD_LANES, _PAD_LANES)),
                            w1, b1, compute_dtype=compute_dtype)
    return y2.reshape((-1,))[:total].reshape(x.shape)


if __name__ == "__main__":
    key = jax.random.PRNGKey(0)
    kx, kw, kb = jax.random.split(key, 3)

    weights = jax.random.normal(kw, (1,), dtype=jnp.float32)
    bias = jax.random.normal(kb, (1,), dtype=jnp.float32)

    # 1) Pallas slab path (total divisible by 128), forced at a small shape.
    x = jax.random.normal(kx, (256, 512), dtype=jnp.float32)
    y = jax.block_until_ready(
        linear_regression_forward(x, weights, bias, force_pallas=True))
    y_ref = weights * x + bias
    assert y.shape == x.shape and y.dtype == x.dtype
    assert jnp.allclose(y, y_ref, atol=1e-6, rtol=1e-6)

    # 2) Pad-fallback path: total (7*33 = 231) not divisible by 128.
    x_odd = jax.random.normal(kx, (7, 33), dtype=jnp.float32)
    y_odd = jax.block_until_ready(
        linear_regression_forward(x_odd, weights, bias, force_pallas=True))
    assert jnp.allclose(y_odd, weights * x_odd + bias, atol=1e-6, rtol=1e-6)

    # 3) bf16 path (native bf16 compute on v6e/v7x, f32 compute elsewhere).
    x_bf = jax.random.normal(kx, (128, 256), dtype=jnp.bfloat16)
    y_bf = jax.block_until_ready(
        linear_regression_forward(x_bf, weights, bias, force_pallas=True))
    ref_bf = weights * x_bf.astype(jnp.float32) + bias
    assert y_bf.dtype == jnp.bfloat16
    assert jnp.allclose(y_bf.astype(jnp.float32), ref_bf, atol=3e-2, rtol=3e-2)

    # 4) Small-input fallback path (plain XLA fusion).
    x_tiny = jax.random.normal(kx, (8, 128), dtype=jnp.float32)
    y_tiny = jax.block_until_ready(linear_regression_forward(x_tiny, weights, bias))
    assert jnp.allclose(y_tiny, weights * x_tiny + bias, atol=1e-6, rtol=1e-6)

    print("KERNEL_OK")
</pallas_src>

<mosaic_0001>
module attributes {stable_mosaic.version = 11 : i64} {
  func.func @_linreg_kernel(%arg0: i32, %arg1: memref<1xf32, #tpu.memory_space<smem>>, %arg2: memref<1xf32, #tpu.memory_space<smem>>, %arg3: memref<16x4096xf32, #tpu.memory_space<vmem>>, %arg4: memref<16x4096xf32, #tpu.memory_space<vmem>>) attributes {dimension_semantics = [#tpu.dimension_semantics<parallel>], iteration_bounds = array<i64: 2>, scalar_prefetch = 0 : i64, scratch_operands = 0 : i64, tpu.core_type = #tpu.core_type<tc>, window_params = [{transform_indices = @transform_0, window_bounds = array<i64: 1>}, {transform_indices = @transform_1, window_bounds = array<i64: 1>}, {transform_indices = @transform_2, window_bounds = array<i64: 16, 4096>}, {transform_indices = @transform_3, window_bounds = array<i64: 16, 4096>}]} {
    %c0 = arith.constant 0 : index
    %0 = memref.load %arg1[%c0] : memref<1xf32, #tpu.memory_space<smem>>
    %c0_0 = arith.constant 0 : index
    %1 = memref.load %arg2[%c0_0] : memref<1xf32, #tpu.memory_space<smem>>
    %c0_1 = arith.constant 0 : index
    %c0_2 = arith.constant 0 : index
    %2 = vector.load %arg3[%c0_1, %c0_2] : memref<16x4096xf32, #tpu.memory_space<vmem>>, vector<16x4096xf32>
    %3 = vector.broadcast %0 : f32 to vector<16x4096xf32>
    %4 = arith.mulf %2, %3 : vector<16x4096xf32>
    %5 = vector.broadcast %1 : f32 to vector<16x4096xf32>
    %6 = arith.addf %4, %5 : vector<16x4096xf32>
    %c0_3 = arith.constant 0 : index
    %c0_4 = arith.constant 0 : index
    %7 = vector.load %arg4[%c0_3, %c0_4] : memref<16x4096xf32, #tpu.memory_space<vmem>>, vector<16x4096xf32>
    tpu.vector_store %arg4[%c0_3, %c0_4], %6 {strides = array<i32>} : memref<16x4096xf32, #tpu.memory_space<vmem>>, vector<16x4096xf32>,
    return
  }
  func.func @transform_0(%arg0: i32) -> i32 {
    %c0_i32 = arith.constant 0 : i32
    %c0_i32_0 = arith.constant 0 : i32
    return %c0_i32 : i32
  }
  func.func @transform_1(%arg0: i32) -> i32 {
    %c0_i32 = arith.constant 0 : i32
    %c0_i32_0 = arith.constant 0 : i32
    return %c0_i32 : i32
  }
  func.func @transform_2(%arg0: i32) -> (i32, i32) {
    %c0_i32 = arith.constant 0 : i32
    %c0_i32_0 = arith.constant 0 : i32
    return %arg0, %c0_i32 : i32, i32
  }
  func.func @transform_3(%arg0: i32) -> (i32, i32) {
    %c0_i32 = arith.constant 0 : i32
    %c0_i32_0 = arith.constant 0 : i32
    return %arg0, %c0_i32 : i32, i32
  }
}

</mosaic_0001>

<bundles_post_ra>
// kernel: tpu_custom_call.1
= control target key start
LH: loop header
LB: loop body
LE: loop exit
PB: predicated region body
PF: predicated region fallthrough
CT: control target
= control target key end

     0   :  { %s1140_s0 = inlined_call_operand.<no memory space> [shape: f32[1], index: 0, kind: input, shape index: {}]   ;;  %s1141_s1 = inlined_call_operand.<no memory space> [shape: f32[1], index: 1, kind: input, shape index: {}]   ;;  %s1142_s2 = inlined_call_operand.hbm [shape: f32[32,4096], index: 2, kind: input, shape index: {}]   ;;  %s1143_s3 = inlined_call_operand.hbm [shape: f32[32,4096], index: 3, kind: output, shape index: {}]  }
   0x1   :  { %8 = sst [smem:[#allocation2]] %s1140_s0 }
   0x2   :  { %9 = sst [smem:[#allocation3]] %s1141_s1 }
   0x3   :  { %10 = vsyncpa [#allocation5], 0 }
   0x4   :  { %12 = vsyncpa [#allocation5 + $0x1], 0 }
   0x5   :  { %13 = vsyncpa [#allocation6], 0 }
   0x6   :  { %15 = vsyncpa [#allocation6 + $0x1], 0  ;;  %s744_s16 = smov 0   ;;  %s746_s17 = smov 0  }
   0x7   :  { %s748_s18 = smov 0   ;;  %s750_s19 = smov 0  }
   0x8 LB: > { %s765_s0 = sadd.s32 4294967295, %s712_s19   ;;  %s546_s1 = sadd.s32 4294967294, %s712_s19   ;;  %s712_s19 = sphi %s750_s19, %s1153_s19   ;;  %s708_s18 = sphi %s748_s18, %s1152_s18   ;;  %s704_s17 = sphi %s746_s17, %s1151_s17   ;;  %s700_s16 = sphi %s744_s16, %s1150_s16  }
   0x9   : > { %s769_s20 = sadd.s32 1, %s712_s19   ;;  %s70_s21 = sadd.s32 1, %s708_s18 }
   0xa   : > { %s67_s22 = ssub.s32 %s712_s19, %s769_s20  ;;  %p77_p0 = scmp.ne.s32.totalorder %s708_s18, %s704_s17 }
   0xb   : > { %p68_p1 = scmp.eq.s32.totalorder %s67_s22, 0  ;;  %p78_p2 = scmp.eq.s32.totalorder %s712_s19, 0 }
   0xc   : > { %p83_p3 = scmp.ne.s32.totalorder %s704_s17, %s700_s16  ;;  %p84_p4 = scmp.eq.s32.totalorder %s765_s0, 0 }
   0xd   : > { %s781_s23 = scalar_select %p68_p1, %s708_s18, %s70_s21  }
   0xe   : > { %p783_p5 = por %p78_p2, %p77_p0  ;;  %p787_p6 = por %p84_p4, %p83_p3 }
   0xf   : > { %p107_p7 = scmp.eq.s32.totalorder %s765_s0, 1  ;;  %p113_p8 = scmp.eq.s32.totalorder %s546_s1, 1 }
  0x10   : > { %p578_p10 = scmp.lt.s32.totalorder %s712_s19, 2  ;;  %s139_s28 = sand.u32 1, %s708_s18  }
  0x11   : > { %p794_p11 = por %p107_p7, %p77_p0  ;;  %p798_p12 = por %p113_p8, %p83_p3 }
  0x12   : > { %s563_s29 = sshll.u32 %s712_s19, 9  ;;  %s549_s30 = sshll.u32 %s139_s28, 9 }
  0x13   : > { %s149_s6 = scalar_lea.hbm %s1142_s2, %s563_s29  ;;  %s143_s8 = scalar_lea.vmem [#allocation4], %s549_s30 }
  0x14   : > { %s150_s7 = sshll.u32 %s149_s6, 4  ;;  %s152_s9 = sshll.u32 %s143_s8, 4  ;;  %s151_s7 = int_to_ptr.hbm [resolvable:$true] %s150_s7  ;;  %s153_s9 = int_to_ptr.vmem [resolvable:$true] %s152_s9 }
  0x15   : > { %p809_p13 = pnand %p578_p10, %p783_p5  ;;  %p553_p0 = scmp.ge.s32.totalorder %s712_s19, 1 }
  0x16   : > { %p160_p1 = scmp.lt.s32.totalorder %s712_s19, 3  ;;  %s140_s11 = scalar_lea.sflag [#allocation5], %s139_s28 }
  0x17   : > { %s616_s12 = sshra.s32 %s151_s7, 4  ;;  %p620_p3 = pneg %p809_p13  ;;  %s617_s12 = int_to_ptr.hbm [resolvable:$true] %s616_s12 }
  0x18   : > { %s618_s13 = scalar_lea.hbm %s617_s12, 512  ;;  %s623_s1 = scalar_lea.hbm %s1142_s2, 1024 }
  0x19   : > { %p619_p2 = scmp.ne.s32.totalorder %s617_s12, %s618_s13  ;;  %p624_p5 = scmp.lt.s32.totalorder %s617_s12, %s1142_s2 }
  0x1a   : > { %p625_p8 = scmp.lt.s32.totalorder %s623_s1, %s618_s13 }
  0x1b   : > { %p621_p4 = pnand %p620_p3, %p619_p2 }
  0x1c   : > { %p626_p10 = por %p625_p8, %p624_p5 }
  0x1d   : > { %p622_p7 = pneg %p621_p4 }
  0x1f   : > { %p627_p9 = pnand %p626_p10, %p622_p7 }
  0x21   : > { %630 = shalt.err (!%p627_p9)
}
  0x22   : > { %s714_s24 = smov 4096   ;;  %s715_s28 = smov 256  }
  0x23   : > { %573 = dma.hbm_to_vmem [thread:$0]  (!%p809_p13), %s151_s7, 8192, %s153_s9, %s140_s11, %s714_s24, %s714_s24, %s715_s28  }
  0x24   : > { %p161_p2 = pnand %p553_p0, %p160_p1 }
  0x25   : > { %s830_s29 = sand.u32 (!%p161_p2), 1, %s704_s17  }
  0x26   : > { %164 = sbr.rel (%p161_p2) target bundleno = 122 (0x7a), region = 32  ;;  %s554_s30 = sshll.u32 (!%p161_p2), %s830_s29, 9 }
  0x27   : > { %s167_s4 = scalar_lea.sflag (!%p161_p2), [#allocation5], %s830_s29  ;;  %s836_s5 = scalar_lea.vmem (!%p161_p2), [#allocation4], %s554_s30 }
  0x2b   : > { %691 = dma.done.wait (%p787_p6), %s167_s4, 8192  }
  0x2c   : > { %693 = vsyncadd (%p787_p6), %s167_s4, 4294959104  ;;  %s196_s6 = sld [smem:[#allocation2]]  ;;  %v198_v0 = vld [vmem:[%s836_s5] sm:$0xff]  ;;  %v199_v2 = vld [vmem:[%s836_s5 + $0x8] sm:$0xff]  ;;  %s871_s25 = scalar_lea.vmem [#allocation7], %s554_s30 }
  0x2d   : > { %s197_s7 = sld [smem:[#allocation3]]  ;;  %v200_v3 = vld [vmem:[%s836_s5 + $0x10] sm:$0xff]  ;;  %v201_v8 = vld [vmem:[%s836_s5 + $0x18] sm:$0xff]  ;;  %v202_v9 = vld [vmem:[%s836_s5 + $0x20] sm:$0xff]  ;;  %s565_s8 = sshll.u32 %s765_s0, 9 }
  0x2e   : > { %v203_v10 = vld [vmem:[%s836_s5 + $0x28] sm:$0xff]  ;;  %v204_v14 = vld [vmem:[%s836_s5 + $0x30] sm:$0xff]  ;;  %v205_v15 = vld [vmem:[%s836_s5 + $0x38] sm:$0xff]  ;;  %s469_s10 = scalar_lea.hbm %s1143_s3, %s565_s8  ;;  %s470_s11 = sshll.u32 %s871_s25, 4  ;;  %s471_s11 = int_to_ptr.vmem [resolvable:$true] %s470_s11 }
  0x2f   : > { %v206_v16 = vld [vmem:[%s836_s5 + $0x40] sm:$0xff]  ;;  %v207_v21 = vld [vmem:[%s836_s5 + $0x48] sm:$0xff]  ;;  %v208_v24 = vld [vmem:[%s836_s5 + $0x50] sm:$0xff]  ;;  %s472_s12 = sshll.u32 %s469_s10, 4  ;;  %s457_s13 = scalar_lea.sflag [#allocation6], %s830_s29  ;;  %s473_s12 = int_to_ptr.hbm [resolvable:$true] %s472_s12 }
  0x30   : > { %v209_v27 = vld [vmem:[%s836_s5 + $0x58] sm:$0xff]  ;;  %v210_v30 = vld [vmem:[%s836_s5 + $0x60] sm:$0xff]  ;;  %v211_v33 = vld [vmem:[%s836_s5 + $0x68] sm:$0xff]  ;;  %s660_s14 = sshra.s32 %s473_s12, 4  ;;  %s666_s22 = scalar_lea.hbm %s1143_s3, 1024  ;;  %s661_s14 = int_to_ptr.hbm [resolvable:$true] %s660_s14 }
  0x31   : > { %v212_v36 = vld [vmem:[%s836_s5 + $0x70] sm:$0xff]  ;;  %v213_v39 = vld [vmem:[%s836_s5 + $0x78] sm:$0xff]  ;;  %v214_v42 = vld [vmem:[%s836_s5 + $0x80] sm:$0xff]  ;;  %s662_s15 = scalar_lea.hbm %s661_s14, 512  ;;  %p667_p0 = scmp.lt.s32.totalorder %s661_s14, %s1143_s3 }
  0x32   : > { %v843_v1 = vstv %s196_s6  ;;  %v215_v45 = vld [vmem:[%s836_s5 + $0x88] sm:$0xff]  ;;  %v216_v48 = vld [vmem:[%s836_s5 + $0x90] sm:$0xff]  ;;  %v217_v51 = vld [vmem:[%s836_s5 + $0x98] sm:$0xff]  ;;  %p663_p6 = scmp.ne.s32.totalorder %s661_s14, %s662_s15  ;;  %p668_p1 = scmp.lt.s32.totalorder %s666_s22, %s662_s15 }
  0x33   : > { %v263_v4 = vmul.f32 %v843_v1, %v198_v0  ;;  %v848_v5 = vstv %s197_s7  ;;  %v264_v6 = vmul.f32 %v843_v1, %v199_v2  ;;  %v265_v7 = vmul.f32 %v843_v1, %v200_v3  ;;  %v218_v54 = vld [vmem:[%s836_s5 + $0xa0] sm:$0xff]  ;;  %v219_v57 = vld [vmem:[%s836_s5 + $0xa8] sm:$0xff]  ;;  %v220_v60 = vld [vmem:[%s836_s5 + $0xb0] sm:$0xff] }
  0x34   : > { %v266_v11 = vmul.f32 %v843_v1, %v201_v8  ;;  %v267_v12 = vmul.f32 %v843_v1, %v202_v9  ;;  %v268_v13 = vmul.f32 %v843_v1, %v203_v10  ;;  %v269_v20 = vmul.f32 %v843_v1, %v204_v14  ;;  %v221_v63 = vld [vmem:[%s836_s5 + $0xb8] sm:$0xff]  ;;  %v222_v3 = vld [vmem:[%s836_s5 + $0xc0] sm:$0xff]  ;;  %v224_v10 = vld [vmem:[%s836_s5 + $0xd0] sm:$0xff]  ;;  %p664_p9 = pnand %p663_p6, %p794_p11  ;;  %p669_p3 = por %p668_p1, %p667_p0 }
  0x35   : > { %v328_v17 = vadd.f32 %v848_v5, %v263_v4  ;;  %v329_v18 = vadd.f32 %v848_v5, %v264_v6  ;;  %v330_v19 = vadd.f32 %v848_v5, %v265_v7  ;;  %v270_v23 = vmul.f32 %v843_v1, %v205_v15  ;;  %v223_v7 = vld [vmem:[%s836_s5 + $0xc8] sm:$0xff] }
  0x36   : > { %v331_v22 = vadd.f32 %v848_v5, %v266_v11  ;;  %v332_v25 = vadd.f32 %v848_v5, %v267_v12  ;;  %v271_v26 = vmul.f32 %v843_v1, %v206_v16  ;;  %v333_v28 = vadd.f32 %v848_v5, %v268_v13  ;;  %v225_v13 = vld [vmem:[%s836_s5 + $0xd8] sm:$0xff]  ;;  %v226_v16 = vld [vmem:[%s836_s5 + $0xe0] sm:$0xff]  ;;  %p665_p13 = pneg %p664_p9 }
  0x37   : > { %392 = vst [vmem:[%s871_s25] sm:$0xff] %v328_v17  ;;  %v272_v29 = vmul.f32 %v843_v1, %v207_v21  ;;  %v334_v31 = vadd.f32 %v848_v5, %v269_v20  ;;  %v273_v32 = vmul.f32 %v843_v1, %v208_v24  ;;  %v335_v34 = vadd.f32 %v848_v5, %v270_v23 }
  0x38   : > { %393 = vst [vmem:[%s871_s25 + $0x8] sm:$0xff] %v329_v18  ;;  %v274_v35 = vmul.f32 %v843_v1, %v209_v27  ;;  %v336_v37 = vadd.f32 %v848_v5, %v271_v26  ;;  %v275_v38 = vmul.f32 %v843_v1, %v210_v30  ;;  %v276_v41 = vmul.f32 %v843_v1, %v211_v33  ;;  %p670_p4 = pnand %p669_p3, %p665_p13 }
  0x39   : > { %394 = vst [vmem:[%s871_s25 + $0x10] sm:$0xff] %v330_v19  ;;  %v337_v40 = vadd.f32 %v848_v5, %v272_v29  ;;  %v338_v43 = vadd.f32 %v848_v5, %v273_v32  ;;  %v277_v44 = vmul.f32 %v843_v1, %v212_v36  ;;  %v278_v47 = vmul.f32 %v843_v1, %v213_v39  ;;  %v227_v19 = vld [vmem:[%s836_s5 + $0xe8] sm:$0xff] }
  0x3a   : > { %395 = vst [vmem:[%s871_s25 + $0x18] sm:$0xff] %v331_v22  ;;  %v339_v46 = vadd.f32 %v848_v5, %v274_v35  ;;  %v340_v49 = vadd.f32 %v848_v5, %v275_v38  ;;  %v279_v50 = vmul.f32 %v843_v1, %v214_v42  ;;  %v341_v52 = vadd.f32 %v848_v5, %v276_v41  ;;  %v228_v22 = vld [vmem:[%s836_s5 + $0xf0] sm:$0xff] }
  0x3b   : > { %396 = vst [vmem:[%s871_s25 + $0x20] sm:$0xff] %v332_v25  ;;  %v280_v53 = vmul.f32 %v843_v1, %v215_v45  ;;  %v342_v55 = vadd.f32 %v848_v5, %v277_v44  ;;  %v281_v56 = vmul.f32 %v843_v1, %v216_v48  ;;  %v343_v58 = vadd.f32 %v848_v5, %v278_v47  ;;  %v229_v25 = vld [vmem:[%s836_s5 + $0xf8] sm:$0xff] }
  0x3c   : > { %397 = vst [vmem:[%s871_s25 + $0x28] sm:$0xff] %v333_v28  ;;  %v282_v59 = vmul.f32 %v843_v1, %v217_v51  ;;  %v344_v61 = vadd.f32 %v848_v5, %v279_v50  ;;  %v283_v62 = vmul.f32 %v843_v1, %v218_v54  ;;  %v284_v2 = vmul.f32 %v843_v1, %v219_v57  ;;  %v230_v28 = vld [vmem:[%s836_s5 + $0x100] sm:$0xff] }
  0x3d   : > { %398 = vst [vmem:[%s871_s25 + $0x30] sm:$0xff] %v334_v31  ;;  %v345_v0 = vadd.f32 %v848_v5, %v280_v53  ;;  %v346_v4 = vadd.f32 %v848_v5, %v281_v56  ;;  %v285_v6 = vmul.f32 %v843_v1, %v220_v60  ;;  %v286_v9 = vmul.f32 %v843_v1, %v221_v63  ;;  %v231_v31 = vld [vmem:[%s836_s5 + $0x108] sm:$0xff] }
  0x3e   : > { %399 = vst [vmem:[%s871_s25 + $0x38] sm:$0xff] %v335_v34  ;;  %v347_v8 = vadd.f32 %v848_v5, %v282_v59  ;;  %v348_v11 = vadd.f32 %v848_v5, %v283_v62  ;;  %v287_v12 = vmul.f32 %v843_v1, %v222_v3  ;;  %v349_v14 = vadd.f32 %v848_v5, %v284_v2  ;;  %v232_v34 = vld [vmem:[%s836_s5 + $0x110] sm:$0xff] }
  0x3f   : > { %400 = vst [vmem:[%s871_s25 + $0x40] sm:$0xff] %v336_v37  ;;  %v288_v15 = vmul.f32 %v843_v1, %v223_v7  ;;  %v350_v17 = vadd.f32 %v848_v5, %v285_v6  ;;  %v289_v18 = vmul.f32 %v843_v1, %v224_v10  ;;  %v351_v20 = vadd.f32 %v848_v5, %v286_v9  ;;  %v233_v37 = vld [vmem:[%s836_s5 + $0x118] sm:$0xff] }
  0x40   : > { %401 = vst [vmem:[%s871_s25 + $0x48] sm:$0xff] %v337_v40  ;;  %v290_v21 = vmul.f32 %v843_v1, %v225_v13  ;;  %v352_v23 = vadd.f32 %v848_v5, %v287_v12  ;;  %v291_v24 = vmul.f32 %v843_v1, %v226_v16  ;;  %v292_v27 = vmul.f32 %v843_v1, %v227_v19  ;;  %v234_v40 = vld [vmem:[%s836_s5 + $0x120] sm:$0xff] }
  0x41   : > { %402 = vst [vmem:[%s871_s25 + $0x50] sm:$0xff] %v338_v43  ;;  %v353_v26 = vadd.f32 %v848_v5, %v288_v15  ;;  %v354_v29 = vadd.f32 %v848_v5, %v289_v18  ;;  %v293_v30 = vmul.f32 %v843_v1, %v228_v22  ;;  %v294_v33 = vmul.f32 %v843_v1, %v229_v25  ;;  %v235_v43 = vld [vmem:[%s836_s5 + $0x128] sm:$0xff] }
  0x42   : > { %403 = vst [vmem:[%s871_s25 + $0x58] sm:$0xff] %v339_v46  ;;  %v355_v32 = vadd.f32 %v848_v5, %v290_v21  ;;  %v356_v35 = vadd.f32 %v848_v5, %v291_v24  ;;  %v295_v36 = vmul.f32 %v843_v1, %v230_v28  ;;  %v357_v38 = vadd.f32 %v848_v5, %v292_v27  ;;  %v236_v46 = vld [vmem:[%s836_s5 + $0x130] sm:$0xff] }
  0x43   : > { %404 = vst [vmem:[%s871_s25 + $0x60] sm:$0xff] %v340_v49  ;;  %v296_v39 = vmul.f32 %v843_v1, %v231_v31  ;;  %v358_v41 = vadd.f32 %v848_v5, %v293_v30  ;;  %v297_v42 = vmul.f32 %v843_v1, %v232_v34  ;;  %v359_v44 = vadd.f32 %v848_v5, %v294_v33  ;;  %v237_v49 = vld [vmem:[%s836_s5 + $0x138] sm:$0xff] }
  0x44   : > { %405 = vst [vmem:[%s871_s25 + $0x68] sm:$0xff] %v341_v52  ;;  %v298_v45 = vmul.f32 %v843_v1, %v233_v37  ;;  %v360_v47 = vadd.f32 %v848_v5, %v295_v36  ;;  %v299_v48 = vmul.f32 %v843_v1, %v234_v40  ;;  %v300_v51 = vmul.f32 %v843_v1, %v235_v43  ;;  %v238_v52 = vld [vmem:[%s836_s5 + $0x140] sm:$0xff] }
  0x45   : > { %406 = vst [vmem:[%s871_s25 + $0x70] sm:$0xff] %v342_v55  ;;  %v361_v50 = vadd.f32 %v848_v5, %v296_v39  ;;  %v362_v53 = vadd.f32 %v848_v5, %v297_v42  ;;  %v301_v54 = vmul.f32 %v843_v1, %v236_v46  ;;  %v239_v55 = vld [vmem:[%s836_s5 + $0x148] sm:$0xff]  ;;  %v302_v57 = vmul.f32 %v843_v1, %v237_v49 }
  0x46   : > { %407 = vst [vmem:[%s871_s25 + $0x78] sm:$0xff] %v343_v58  ;;  %v363_v56 = vadd.f32 %v848_v5, %v298_v45  ;;  %v240_v58 = vld [vmem:[%s836_s5 + $0x150] sm:$0xff]  ;;  %v364_v59 = vadd.f32 %v848_v5, %v299_v48  ;;  %v303_v60 = vmul.f32 %v843_v1, %v238_v52  ;;  %v365_v62 = vadd.f32 %v848_v5, %v300_v51 }
  0x47   : > { %408 = vst [vmem:[%s871_s25 + $0x80] sm:$0xff] %v344_v61  ;;  %v241_v61 = vld [vmem:[%s836_s5 + $0x158] sm:$0xff]  ;;  %v304_v63 = vmul.f32 %v843_v1, %v239_v55  ;;  %v366_v2 = vadd.f32 %v848_v5, %v301_v54  ;;  %v305_v3 = vmul.f32 %v843_v1, %v240_v58  ;;  %v367_v6 = vadd.f32 %v848_v5, %v302_v57 }
  0x48   : > { %409 = vst [vmem:[%s871_s25 + $0x88] sm:$0xff] %v345_v0  ;;  %v242_v0 = vld [vmem:[%s836_s5 + $0x160] sm:$0xff]  ;;  %v306_v7 = vmul.f32 %v843_v1, %v241_v61  ;;  %v368_v9 = vadd.f32 %v848_v5, %v303_v60 }
  0x49   : > { %410 = vst [vmem:[%s871_s25 + $0x90] sm:$0xff] %v346_v4  ;;  %v243_v4 = vld [vmem:[%s836_s5 + $0x168] sm:$0xff]  ;;  %v307_v10 = vmul.f32 %v843_v1, %v242_v0  ;;  %v369_v12 = vadd.f32 %v848_v5, %v304_v63  ;;  %v370_v15 = vadd.f32 %v848_v5, %v305_v3 }
  0x4a   : > { %411 = vst [vmem:[%s871_s25 + $0x98] sm:$0xff] %v347_v8  ;;  %v244_v8 = vld [vmem:[%s836_s5 + $0x170] sm:$0xff]  ;;  %v308_v13 = vmul.f32 %v843_v1, %v243_v4  ;;  %v371_v18 = vadd.f32 %v848_v5, %v306_v7 }
  0x4b   : > { %412 = vst [vmem:[%s871_s25 + $0xa0] sm:$0xff] %v348_v11  ;;  %v245_v11 = vld [vmem:[%s836_s5 + $0x178] sm:$0xff]  ;;  %v309_v16 = vmul.f32 %v843_v1, %v244_v8  ;;  %v372_v21 = vadd.f32 %v848_v5, %v307_v10 }
  0x4c   : > { %413 = vst [vmem:[%s871_s25 + $0xa8] sm:$0xff] %v349_v14  ;;  %v246_v14 = vld [vmem:[%s836_s5 + $0x180] sm:$0xff]  ;;  %v310_v19 = vmul.f32 %v843_v1, %v245_v11  ;;  %v373_v24 = vadd.f32 %v848_v5, %v308_v13 }
  0x4d   : > { %414 = vst [vmem:[%s871_s25 + $0xb0] sm:$0xff] %v350_v17  ;;  %v247_v17 = vld [vmem:[%s836_s5 + $0x188] sm:$0xff]  ;;  %v311_v22 = vmul.f32 %v843_v1, %v246_v14  ;;  %v374_v27 = vadd.f32 %v848_v5, %v309_v16 }
  0x4e   : > { %415 = vst [vmem:[%s871_s25 + $0xb8] sm:$0xff] %v351_v20  ;;  %v248_v20 = vld [vmem:[%s836_s5 + $0x190] sm:$0xff]  ;;  %v312_v25 = vmul.f32 %v843_v1, %v247_v17  ;;  %v375_v30 = vadd.f32 %v848_v5, %v310_v19 }
  0x4f   : > { %416 = vst [vmem:[%s871_s25 + $0xc0] sm:$0xff] %v352_v23  ;;  %v249_v23 = vld [vmem:[%s836_s5 + $0x198] sm:$0xff]  ;;  %v313_v28 = vmul.f32 %v843_v1, %v248_v20  ;;  %v376_v33 = vadd.f32 %v848_v5, %v311_v22 }
  0x50   : > { %417 = vst [vmem:[%s871_s25 + $0xc8] sm:$0xff] %v353_v26  ;;  %v250_v26 = vld [vmem:[%s836_s5 + $0x1a0] sm:$0xff]  ;;  %v314_v31 = vmul.f32 %v843_v1, %v249_v23  ;;  %v377_v36 = vadd.f32 %v848_v5, %v312_v25 }
  0x51   : > { %418 = vst [vmem:[%s871_s25 + $0xd0] sm:$0xff] %v354_v29  ;;  %v251_v29 = vld [vmem:[%s836_s5 + $0x1a8] sm:$0xff]  ;;  %v315_v34 = vmul.f32 %v843_v1, %v250_v26  ;;  %v378_v39 = vadd.f32 %v848_v5, %v313_v28 }
  0x52   : > { %419 = vst [vmem:[%s871_s25 + $0xd8] sm:$0xff] %v355_v32  ;;  %v252_v32 = vld [vmem:[%s836_s5 + $0x1b0] sm:$0xff]  ;;  %v316_v37 = vmul.f32 %v843_v1, %v251_v29  ;;  %v379_v42 = vadd.f32 %v848_v5, %v314_v31 }
  0x53   : > { %420 = vst [vmem:[%s871_s25 + $0xe0] sm:$0xff] %v356_v35  ;;  %v253_v35 = vld [vmem:[%s836_s5 + $0x1b8] sm:$0xff]  ;;  %v317_v40 = vmul.f32 %v843_v1, %v252_v32  ;;  %v380_v45 = vadd.f32 %v848_v5, %v315_v34 }
  0x54   : > { %421 = vst [vmem:[%s871_s25 + $0xe8] sm:$0xff] %v357_v38  ;;  %v254_v38 = vld [vmem:[%s836_s5 + $0x1c0] sm:$0xff]  ;;  %v318_v43 = vmul.f32 %v843_v1, %v253_v35  ;;  %v381_v48 = vadd.f32 %v848_v5, %v316_v37 }
  0x55   : > { %422 = vst [vmem:[%s871_s25 + $0xf0] sm:$0xff] %v358_v41  ;;  %v255_v41 = vld [vmem:[%s836_s5 + $0x1c8] sm:$0xff]  ;;  %v319_v46 = vmul.f32 %v843_v1, %v254_v38  ;;  %v382_v51 = vadd.f32 %v848_v5, %v317_v40 }
  0x56   : > { %423 = vst [vmem:[%s871_s25 + $0xf8] sm:$0xff] %v359_v44  ;;  %v256_v44 = vld [vmem:[%s836_s5 + $0x1d0] sm:$0xff]  ;;  %v320_v49 = vmul.f32 %v843_v1, %v255_v41  ;;  %v383_v54 = vadd.f32 %v848_v5, %v318_v43 }
  0x57   : > { %424 = vst [vmem:[%s871_s25 + $0x100] sm:$0xff] %v360_v47  ;;  %v257_v47 = vld [vmem:[%s836_s5 + $0x1d8] sm:$0xff]  ;;  %v321_v52 = vmul.f32 %v843_v1, %v256_v44  ;;  %v384_v57 = vadd.f32 %v848_v5, %v319_v46 }
  0x58   : > { %425 = vst [vmem:[%s871_s25 + $0x108] sm:$0xff] %v361_v50  ;;  %v258_v50 = vld [vmem:[%s836_s5 + $0x1e0] sm:$0xff]  ;;  %v322_v55 = vmul.f32 %v843_v1, %v257_v47  ;;  %v385_v60 = vadd.f32 %v848_v5, %v320_v49 }
  0x59   : > { %426 = vst [vmem:[%s871_s25 + $0x110] sm:$0xff] %v362_v53  ;;  %v259_v53 = vld [vmem:[%s836_s5 + $0x1e8] sm:$0xff]  ;;  %v323_v58 = vmul.f32 %v843_v1, %v258_v50 }
  0x5a   : > { %427 = vst [vmem:[%s871_s25 + $0x118] sm:$0xff] %v363_v56  ;;  %v260_v56 = vld [vmem:[%s836_s5 + $0x1f0] sm:$0xff]  ;;  %v324_v61 = vmul.f32 %v843_v1, %v259_v53  ;;  %v387_v0 = vadd.f32 %v848_v5, %v322_v55 }
  0x5b   : > { %428 = vst [vmem:[%s871_s25 + $0x120] sm:$0xff] %v364_v59  ;;  %v261_v59 = vld [vmem:[%s836_s5 + $0x1f8] sm:$0xff]  ;;  %v325_v63 = vmul.f32 %v843_v1, %v260_v56  ;;  %v388_v3 = vadd.f32 %v848_v5, %v323_v58 }
  0x5c   : > { %429 = vst [vmem:[%s871_s25 + $0x128] sm:$0xff] %v365_v62  ;;  %v386_v62 = vadd.f32 %v848_v5, %v321_v52  ;;  %v389_v4 = vadd.f32 %v848_v5, %v324_v61 }
  0x5d   : > { %430 = vst [vmem:[%s871_s25 + $0x130] sm:$0xff] %v366_v2  ;;  %v326_v2 = vmul.f32 %v843_v1, %v261_v59 }
  0x5e   : > { %431 = vst [vmem:[%s871_s25 + $0x138] sm:$0xff] %v367_v6  ;;  %v390_v6 = vadd.f32 %v848_v5, %v325_v63 }
  0x5f   : > { %432 = vst [vmem:[%s871_s25 + $0x140] sm:$0xff] %v368_v9  ;;  %v391_v7 = vadd.f32 %v848_v5, %v326_v2 }
  0x60   : > { %433 = vst [vmem:[%s871_s25 + $0x148] sm:$0xff] %v369_v12 }
  0x61   : > { %434 = vst [vmem:[%s871_s25 + $0x150] sm:$0xff] %v370_v15 }
  0x62   : > { %435 = vst [vmem:[%s871_s25 + $0x158] sm:$0xff] %v371_v18 }
  0x63   : > { %436 = vst [vmem:[%s871_s25 + $0x160] sm:$0xff] %v372_v21 }
  0x64   : > { %437 = vst [vmem:[%s871_s25 + $0x168] sm:$0xff] %v373_v24 }
  0x65   : > { %438 = vst [vmem:[%s871_s25 + $0x170] sm:$0xff] %v374_v27 }
  0x66   : > { %439 = vst [vmem:[%s871_s25 + $0x178] sm:$0xff] %v375_v30 }
  0x67   : > { %440 = vst [vmem:[%s871_s25 + $0x180] sm:$0xff] %v376_v33 }
  0x68   : > { %441 = vst [vmem:[%s871_s25 + $0x188] sm:$0xff] %v377_v36 }
  0x69   : > { %442 = vst [vmem:[%s871_s25 + $0x190] sm:$0xff] %v378_v39 }
  0x6a   : > { %443 = vst [vmem:[%s871_s25 + $0x198] sm:$0xff] %v379_v42 }
  0x6b   : > { %444 = vst [vmem:[%s871_s25 + $0x1a0] sm:$0xff] %v380_v45 }
  0x6c   : > { %445 = vst [vmem:[%s871_s25 + $0x1a8] sm:$0xff] %v381_v48 }
  0x6d   : > { %446 = vst [vmem:[%s871_s25 + $0x1b0] sm:$0xff] %v382_v51 }
  0x6e   : > { %447 = vst [vmem:[%s871_s25 + $0x1b8] sm:$0xff] %v383_v54 }
  0x6f   : > { %448 = vst [vmem:[%s871_s25 + $0x1c0] sm:$0xff] %v384_v57 }
  0x70   : > { %449 = vst [vmem:[%s871_s25 + $0x1c8] sm:$0xff] %v385_v60 }
  0x71   : > { %450 = vst [vmem:[%s871_s25 + $0x1d0] sm:$0xff] %v386_v62 }
  0x72   : > { %451 = vst [vmem:[%s871_s25 + $0x1d8] sm:$0xff] %v387_v0 }
  0x73   : > { %452 = vst [vmem:[%s871_s25 + $0x1e0] sm:$0xff] %v388_v3 }
  0x74   : > { %453 = vst [vmem:[%s871_s25 + $0x1e8] sm:$0xff] %v389_v4 }
  0x75   : > { %454 = vst [vmem:[%s871_s25 + $0x1f0] sm:$0xff] %v390_v6 }
  0x76   : > { %455 = vst [vmem:[%s871_s25 + $0x1f8] sm:$0xff] %v391_v7 }
  0x77   : > { %673 = shalt.err (!%p670_p4)
}
  0x78   : > { %s716_s29 = smov 4096   ;;  %s717_s30 = smov 256  }
  0x79   : > { %568 = dma.vmem_to_hbm [thread:$0]  (%p794_p11), %s471_s11, 8192, %s473_s12, %s457_s13, %s716_s29, %s716_s29, %s717_s30  }
  0x7a PF: > { %s487_s4 = sand.u32 1, %s700_s16   ;;  %p1149_p7 = scmp.ge.s32.totalorder %s712_s19, 2 }
  0x7b   : > { %s488_s5 = scalar_lea.sflag [#allocation6], %s487_s4 }
  0x7c   : > { %p575_p5 = pnand %p1149_p7, %p798_p12 }
  0x7e   : > { %p576_p8 = pneg %p575_p5 }
  0x80   : > { %695 = dma.done.wait (%p576_p8), %s488_s5, 8192  }
  0x81   : > { %697 = vsyncadd (%p576_p8), %s488_s5, 4294959104  ;;  %p18_p10 = scmp.ge.s32.totalorder %s769_s20, 4   ;;  %s1150_s16 = smov %s704_s17 }
  0x82   : > { %s1151_s17 = smov %s708_s18  ;;  %s1152_s18 = smov %s781_s23 }
  0x83   : > { %s1153_s19 = smov %s769_s20  ;;  %20 = sbr.rel (!%p18_p10) target bundleno = 8 (0x8), region = 77 }
  0x88   :  { %494 = vsyncpa [#allocation5], 1 }
  0x89   :  { %496 = vsyncpa [#allocation5 + $0x1], 1 }
  0x8a   :  { %497 = vsyncpa [#allocation6], 1 }
  0x8b   :  { %499 = vsyncpa [#allocation6 + $0x1], 1 }

</bundles_post_ra>
